<compile_context>
chip_gen: v5e
topology: v5e:2x2
jax: 0.10.0
libtpu: 0.0.40
codegen_flags: <defaults>
</compile_context>

<pallas_src>
import functools

import jax
import jax.numpy as jnp
from jax.experimental import pallas as pl
from jax.experimental.pallas import tpu as pltpu

EPS = 1e-5


def _resnet_block_kernel(x_ref, w1_ref, b1_ref, w2_ref, b2_ref, o_ref, *, H, W):
    C = x_ref.shape[1]
    HW = H * W
    inv_hw = 1.0 / HW

    x = x_ref[0].astype(jnp.float32)          # (C, H*W), lane-dense
    w1 = w1_ref[...].astype(jnp.float32)      # (C, 9*C)
    w2 = w2_ref[...].astype(jnp.float32)
    b1 = b1_ref[...].astype(jnp.float32)      # (C, 1)
    b2 = b2_ref[...].astype(jnp.float32)

    # Lane-index masks for the reflect boundaries (computed once, reused by
    # both convs).
    lane = jax.lax.broadcasted_iota(jnp.int32, (C, HW), 1)
    w_idx = lane % W
    h_first = lane < W                    # h == 0
    h_last = lane >= (H - 1) * W          # h == H-1
    w_first = w_idx == 0                  # w == 0
    w_last = w_idx == (W - 1)             # w == W-1

    def im2col(xf):
        # Build the (9*C, H*W) im2col slab for a 3x3 reflect-padded conv using
        # full-axis lane rolls + boundary selects.  No padded buffer, no
        # unaligned slices, no relayouts (each tap chunk is a full 8-sublane
        # tile for C=8, and the lane dim stays H*W).
        xm = pltpu.roll(xf, shift=W, axis=1)        # x[h-1, w] (wraps at h=0)
        xp = pltpu.roll(xf, shift=HW - W, axis=1)   # x[h+1, w] (wraps at h=H-1)
        a_rows = (
            jnp.where(h_first, xp, xm),   # kh=0: x[reflect(h-1), w]
            xf,                           # kh=1: x[h, w]
            jnp.where(h_last, xm, xp),    # kh=2: x[reflect(h+1), w]
        )
        taps = []
        for a in a_rows:
            am = pltpu.roll(a, shift=1, axis=1)        # a[h, w-1] (wraps at w=0)
            ap = pltpu.roll(a, shift=HW - 1, axis=1)   # a[h, w+1] (wraps at w=W-1)
            taps.append(jnp.where(w_first, ap, am))    # kw=0: a[h, reflect(w-1)]
            taps.append(a)                             # kw=1
            taps.append(jnp.where(w_last, am, ap))     # kw=2: a[h, reflect(w+1)]
        return jnp.concatenate(taps, axis=0)           # (9*C, H*W)

    def conv3x3(xf, w_mat, b):
        # Single MXU matmul, contraction depth 9*C.
        return jnp.dot(w_mat, im2col(xf),
                       preferred_element_type=jnp.float32) + b

    def instance_norm(y):
        # Single-pass sum / sum-of-squares; biased variance (matches
        # nn.InstanceNorm2d with affine=False).
        s1 = jnp.sum(y, axis=1, keepdims=True)
        s2 = jnp.sum(y * y, axis=1, keepdims=True)
        mean = s1 * inv_hw
        var = s2 * inv_hw - mean * mean
        return (y - mean) * jax.lax.rsqrt(var + EPS)

    y = jnp.maximum(instance_norm(conv3x3(x, w1, b1)), 0.0)
    z = instance_norm(conv3x3(y, w2, b2))
    o_ref[0] = (x + z).astype(o_ref.dtype)


def resnet_block(x_nchw, w1_oihw, b1, w2_oihw, b2):
    """x_nchw: (N, C, H, W); weights in PyTorch OIHW layout; biases (C,)."""
    N, C, H, W = x_nchw.shape
    assert H >= 2 and W >= 2, "ReflectionPad2d(1) requires H, W >= 2"
    HW = H * W

    # Metadata-only reshape (NCHW row-major): no HBM round trip.
    x = x_nchw.reshape(N, C, HW)
    # (Cout, Cin, kh, kw) -> (Cout, kh, kw, Cin) -> (Cout, 9*Cin); matches the
    # tap-major / channel-minor row ordering produced by im2col() above.
    w1 = jnp.transpose(w1_oihw, (0, 2, 3, 1)).reshape(C, 9 * C)
    w2 = jnp.transpose(w2_oihw, (0, 2, 3, 1)).reshape(C, 9 * C)
    b1 = b1.reshape(C, 1)
    b2 = b2.reshape(C, 1)

    kernel = functools.partial(_resnet_block_kernel, H=H, W=W)
    flops = 2 * 2 * 9 * HW * C * C * N            # two 3x3 convs
    bytes_accessed = 4 * (2 * N * C * HW + 2 * 9 * C * C + 2 * C)

    out = pl.pallas_call(
        kernel,
        out_shape=jax.ShapeDtypeStruct((N, C, HW), x.dtype),
        grid_spec=pltpu.PrefetchScalarGridSpec(
            num_scalar_prefetch=0,
            grid=(N,),
            in_specs=[
                pl.BlockSpec((1, C, HW), lambda n: (n, 0, 0)),
                pl.BlockSpec((C, 9 * C), lambda n: (0, 0)),   # resident
                pl.BlockSpec((C, 1), lambda n: (0, 0)),
                pl.BlockSpec((C, 9 * C), lambda n: (0, 0)),   # resident
                pl.BlockSpec((C, 1), lambda n: (0, 0)),
            ],
            out_specs=pl.BlockSpec((1, C, HW), lambda n: (n, 0, 0)),
        ),
        compiler_params=pltpu.CompilerParams(
            dimension_semantics=("parallel",)),
        cost_estimate=pl.CostEstimate(
            flops=flops, transcendentals=4 * N * C,
            bytes_accessed=bytes_accessed),
    )(x, w1, b1, w2, b2)
    return out.reshape(N, C, H, W)


def _reference(x_nchw, w1, b1, w2, b2):
    # Pure-JAX reference of the same forward (NCHW, like PyTorch).
    def conv(x, w, b):
        xp = jnp.pad(x, ((0, 0), (0, 0), (1, 1), (1, 1)), mode='reflect')
        y = jax.lax.conv_general_dilated(
            xp, w, (1, 1), 'VALID',
            dimension_numbers=('NCHW', 'OIHW', 'NCHW'))
        return y + b.reshape(1, -1, 1, 1)

    def inorm(y):
        m = jnp.mean(y, axis=(2, 3), keepdims=True)
        v = jnp.mean((y - m) ** 2, axis=(2, 3), keepdims=True)
        return (y - m) / jnp.sqrt(v + EPS)

    y = jax.nn.relu(inorm(conv(x_nchw, w1, b1)))
    z = inorm(conv(y, w2, b2))
    return x_nchw + z


if __name__ == "__main__":
    N, C, H, W = 2, 8, 16, 16   # dim = 8
    key = jax.random.PRNGKey(0)
    kx, kw1, kb1, kw2, kb2 = jax.random.split(key, 5)

    x = jax.random.normal(kx, (N, C, H, W), dtype=jnp.float32)
    w1 = 0.1 * jax.random.normal(kw1, (C, C, 3, 3), dtype=jnp.float32)
    b1 = 0.1 * jax.random.normal(kb1, (C,), dtype=jnp.float32)
    w2 = 0.1 * jax.random.normal(kw2, (C, C, 3, 3), dtype=jnp.float32)
    b2 = 0.1 * jax.random.normal(kb2, (C,), dtype=jnp.float32)

    out = jax.block_until_ready(resnet_block(x, w1, b1, w2, b2))

    ref = _reference(x, w1, b1, w2, b2)
    assert out.shape == (N, C, H, W)
    assert jnp.allclose(out, ref, atol=1e-4, rtol=1e-4), "mismatch vs reference"

    print("KERNEL_OK")
</pallas_src>

<mosaic_0001>
module attributes {stable_mosaic.version = 11 : i64} {
  func.func @_resnet_block_kernel(%arg0: i32, %arg1: memref<1x8x256xf32, #tpu.memory_space<vmem>>, %arg2: memref<8x72xf32, #tpu.memory_space<vmem>>, %arg3: memref<8x1xf32, #tpu.memory_space<vmem>>, %arg4: memref<8x72xf32, #tpu.memory_space<vmem>>, %arg5: memref<8x1xf32, #tpu.memory_space<vmem>>, %arg6: memref<1x8x256xf32, #tpu.memory_space<vmem>>) attributes {dimension_semantics = [#tpu.dimension_semantics<parallel>], iteration_bounds = array<i64: 2>, scalar_prefetch = 0 : i64, scratch_operands = 0 : i64, tpu.core_type = #tpu.core_type<tc>, window_params = [{transform_indices = @transform_0, window_bounds = array<i64: 1, 8, 256>}, {pipeline_mode = #tpu.pipeline_mode<synchronous>, transform_indices = @transform_1, window_bounds = array<i64: 8, 72>}, {pipeline_mode = #tpu.pipeline_mode<synchronous>, transform_indices = @transform_2, window_bounds = array<i64: 8, 1>}, {pipeline_mode = #tpu.pipeline_mode<synchronous>, transform_indices = @transform_3, window_bounds = array<i64: 8, 72>}, {pipeline_mode = #tpu.pipeline_mode<synchronous>, transform_indices = @transform_4, window_bounds = array<i64: 8, 1>}, {transform_indices = @transform_5, window_bounds = array<i64: 1, 8, 256>}]} {
    %c0 = arith.constant 0 : index
    %c0_0 = arith.constant 0 : index
    %c0_1 = arith.constant 0 : index
    %0 = vector.load %arg1[%c0, %c0_0, %c0_1] : memref<1x8x256xf32, #tpu.memory_space<vmem>>, vector<1x8x256xf32>
    %1 = vector.shape_cast %0 : vector<1x8x256xf32> to vector<8x256xf32>
    %c0_2 = arith.constant 0 : index
    %c0_3 = arith.constant 0 : index
    %2 = vector.load %arg2[%c0_2, %c0_3] : memref<8x72xf32, #tpu.memory_space<vmem>>, vector<8x72xf32>
    %c0_4 = arith.constant 0 : index
    %c0_5 = arith.constant 0 : index
    %3 = vector.load %arg4[%c0_4, %c0_5] : memref<8x72xf32, #tpu.memory_space<vmem>>, vector<8x72xf32>
    %c0_6 = arith.constant 0 : index
    %c0_7 = arith.constant 0 : index
    %4 = vector.load %arg3[%c0_6, %c0_7] : memref<8x1xf32, #tpu.memory_space<vmem>>, vector<8x1xf32>
    %c0_8 = arith.constant 0 : index
    %c0_9 = arith.constant 0 : index
    %5 = vector.load %arg5[%c0_8, %c0_9] : memref<8x1xf32, #tpu.memory_space<vmem>>, vector<8x1xf32>
    %6 = tpu.iota {dimensions = array<i32: 1>} : vector<8x256xi32>
    %c16_i32 = arith.constant 16 : i32
    %c0_i32 = arith.constant 0 : i32
    %7 = arith.cmpi eq, %c16_i32, %c0_i32 : i32
    %c1_i32 = arith.constant 1 : i32
    %8 = arith.select %7, %c1_i32, %c16_i32 : i32
    %9 = vector.broadcast %8 : i32 to vector<8x256xi32>
    %10 = arith.remsi %6, %9 : vector<8x256xi32>
    %c0_i32_10 = arith.constant 0 : i32
    %11 = vector.broadcast %c0_i32_10 : i32 to vector<8x256xi32>
    %12 = arith.cmpi ne, %10, %11 : vector<8x256xi32>
    %c0_i32_11 = arith.constant 0 : i32
    %13 = vector.broadcast %c0_i32_11 : i32 to vector<8x256xi32>
    %14 = arith.cmpi slt, %10, %13 : vector<8x256xi32>
    %c0_i32_12 = arith.constant 0 : i32
    %15 = arith.cmpi slt, %8, %c0_i32_12 : i32
    %16 = vector.broadcast %15 : i1 to vector<8x256xi1>
    %17 = vector.broadcast %16 : vector<8x256xi1> to vector<8x256xi1>
    %18 = arith.xori %14, %17 : vector<8x256xi1>
    %19 = arith.andi %18, %12 : vector<8x256xi1>
    %20 = vector.broadcast %8 : i32 to vector<8x256xi32>
    %21 = arith.addi %10, %20 : vector<8x256xi32>
    %22 = arith.select %19, %21, %10 : vector<8x256xi1>, vector<8x256xi32>
    %c16_i32_13 = arith.constant 16 : i32
    %23 = vector.broadcast %c16_i32_13 : i32 to vector<8x256xi32>
    %24 = arith.cmpi slt, %6, %23 : vector<8x256xi32>
    %c240_i32 = arith.constant 240 : i32
    %25 = vector.broadcast %c240_i32 : i32 to vector<8x256xi32>
    %26 = arith.cmpi sge, %6, %25 : vector<8x256xi32>
    %c0_i32_14 = arith.constant 0 : i32
    %27 = vector.broadcast %c0_i32_14 : i32 to vector<8x256xi32>
    %28 = arith.cmpi eq, %22, %27 : vector<8x256xi32>
    %c15_i32 = arith.constant 15 : i32
    %29 = vector.broadcast %c15_i32 : i32 to vector<8x256xi32>
    %30 = arith.cmpi eq, %22, %29 : vector<8x256xi32>
    %c16_i32_15 = arith.constant 16 : i32
    %31 = tpu.dynamic_rotate %1 by %c16_i32_15 dim 1 : vector<8x256xf32>, i32 -> vector<8x256xf32>
    %c240_i32_16 = arith.constant 240 : i32
    %32 = tpu.dynamic_rotate %1 by %c240_i32_16 dim 1 : vector<8x256xf32>, i32 -> vector<8x256xf32>
    %33 = arith.select %24, %32, %31 : vector<8x256xi1>, vector<8x256xf32>
    %34 = arith.select %26, %31, %32 : vector<8x256xi1>, vector<8x256xf32>
    %c1_i32_17 = arith.constant 1 : i32
    %35 = tpu.dynamic_rotate %33 by %c1_i32_17 dim 1 : vector<8x256xf32>, i32 -> vector<8x256xf32>
    %c255_i32 = arith.constant 255 : i32
    %36 = tpu.dynamic_rotate %33 by %c255_i32 dim 1 : vector<8x256xf32>, i32 -> vector<8x256xf32>
    %37 = arith.select %28, %36, %35 : vector<8x256xi1>, vector<8x256xf32>
    %38 = arith.select %30, %35, %36 : vector<8x256xi1>, vector<8x256xf32>
    %c1_i32_18 = arith.constant 1 : i32
    %39 = tpu.dynamic_rotate %1 by %c1_i32_18 dim 1 : vector<8x256xf32>, i32 -> vector<8x256xf32>
    %c255_i32_19 = arith.constant 255 : i32
    %40 = tpu.dynamic_rotate %1 by %c255_i32_19 dim 1 : vector<8x256xf32>, i32 -> vector<8x256xf32>
    %41 = arith.select %28, %40, %39 : vector<8x256xi1>, vector<8x256xf32>
    %42 = arith.select %30, %39, %40 : vector<8x256xi1>, vector<8x256xf32>
    %c1_i32_20 = arith.constant 1 : i32
    %43 = tpu.dynamic_rotate %34 by %c1_i32_20 dim 1 : vector<8x256xf32>, i32 -> vector<8x256xf32>
    %c255_i32_21 = arith.constant 255 : i32
    %44 = tpu.dynamic_rotate %34 by %c255_i32_21 dim 1 : vector<8x256xf32>, i32 -> vector<8x256xf32>
    %45 = arith.select %28, %44, %43 : vector<8x256xi1>, vector<8x256xf32>
    %46 = arith.select %30, %43, %44 : vector<8x256xi1>, vector<8x256xf32>
    %47 = tpu.concatenate %37, %33, %38, %41, %1, %42, %45, %34, %46 in 0 : vector<8x256xf32>, vector<8x256xf32>, vector<8x256xf32>, vector<8x256xf32>, vector<8x256xf32>, vector<8x256xf32>, vector<8x256xf32>, vector<8x256xf32>, vector<8x256xf32> -> vector<72x256xf32>
    %cst = arith.constant dense<0.000000e+00> : vector<8x256xf32>
    %48 = tpu.matmul %2, %47, %cst {dimension_numbers = #tpu.dot_dimension_numbers<[1], [0], [0], [1], [0, 0, 1, 1], [], []>} : vector<8x72xf32>, vector<72x256xf32>, vector<8x256xf32> -> vector<8x256xf32>
    %49 = vector.broadcast %4 : vector<8x1xf32> to vector<8x256xf32>
    %50 = arith.addf %48, %49 : vector<8x256xf32>
    %cst_22 = arith.constant dense<0.000000e+00> : vector<8xf32>
    %51 = vector.multi_reduction <add>, %50, %cst_22 [1] : vector<8x256xf32> to vector<8xf32>
    %52 = vector.shape_cast %51 : vector<8xf32> to vector<8x1xf32>
    %53 = arith.mulf %50, %50 : vector<8x256xf32>
    %cst_23 = arith.constant dense<0.000000e+00> : vector<8xf32>
    %54 = vector.multi_reduction <add>, %53, %cst_23 [1] : vector<8x256xf32> to vector<8xf32>
    %55 = vector.shape_cast %54 : vector<8xf32> to vector<8x1xf32>
    %cst_24 = arith.constant 3.906250e-03 : f32
    %56 = vector.broadcast %cst_24 : f32 to vector<8x1xf32>
    %57 = arith.mulf %52, %56 : vector<8x1xf32>
    %cst_25 = arith.constant 3.906250e-03 : f32
    %58 = vector.broadcast %cst_25 : f32 to vector<8x1xf32>
    %59 = arith.mulf %55, %58 : vector<8x1xf32>
    %60 = arith.mulf %57, %57 : vector<8x1xf32>
    %61 = arith.subf %59, %60 : vector<8x1xf32>
    %62 = vector.broadcast %57 : vector<8x1xf32> to vector<8x256xf32>
    %63 = arith.subf %50, %62 : vector<8x256xf32>
    %cst_26 = arith.constant 9.99999974E-6 : f32
    %64 = vector.broadcast %cst_26 : f32 to vector<8x1xf32>
    %65 = arith.addf %61, %64 : vector<8x1xf32>
    %66 = math.rsqrt %65 : vector<8x1xf32>
    %67 = vector.broadcast %66 : vector<8x1xf32> to vector<8x256xf32>
    %68 = arith.mulf %63, %67 : vector<8x256xf32>
    %cst_27 = arith.constant 0.000000e+00 : f32
    %69 = vector.broadcast %cst_27 : f32 to vector<8x256xf32>
    %70 = arith.maximumf %68, %69 : vector<8x256xf32>
    %c16_i32_28 = arith.constant 16 : i32
    %71 = tpu.dynamic_rotate %70 by %c16_i32_28 dim 1 : vector<8x256xf32>, i32 -> vector<8x256xf32>
    %c240_i32_29 = arith.constant 240 : i32
    %72 = tpu.dynamic_rotate %70 by %c240_i32_29 dim 1 : vector<8x256xf32>, i32 -> vector<8x256xf32>
    %73 = arith.select %24, %72, %71 : vector<8x256xi1>, vector<8x256xf32>
    %74 = arith.select %26, %71, %72 : vector<8x256xi1>, vector<8x256xf32>
    %c1_i32_30 = arith.constant 1 : i32
    %75 = tpu.dynamic_rotate %73 by %c1_i32_30 dim 1 : vector<8x256xf32>, i32 -> vector<8x256xf32>
    %c255_i32_31 = arith.constant 255 : i32
    %76 = tpu.dynamic_rotate %73 by %c255_i32_31 dim 1 : vector<8x256xf32>, i32 -> vector<8x256xf32>
    %77 = arith.select %28, %76, %75 : vector<8x256xi1>, vector<8x256xf32>
    %78 = arith.select %30, %75, %76 : vector<8x256xi1>, vector<8x256xf32>
    %c1_i32_32 = arith.constant 1 : i32
    %79 = tpu.dynamic_rotate %70 by %c1_i32_32 dim 1 : vector<8x256xf32>, i32 -> vector<8x256xf32>
    %c255_i32_33 = arith.constant 255 : i32
    %80 = tpu.dynamic_rotate %70 by %c255_i32_33 dim 1 : vector<8x256xf32>, i32 -> vector<8x256xf32>
    %81 = arith.select %28, %80, %79 : vector<8x256xi1>, vector<8x256xf32>
    %82 = arith.select %30, %79, %80 : vector<8x256xi1>, vector<8x256xf32>
    %c1_i32_34 = arith.constant 1 : i32
    %83 = tpu.dynamic_rotate %74 by %c1_i32_34 dim 1 : vector<8x256xf32>, i32 -> vector<8x256xf32>
    %c255_i32_35 = arith.constant 255 : i32
    %84 = tpu.dynamic_rotate %74 by %c255_i32_35 dim 1 : vector<8x256xf32>, i32 -> vector<8x256xf32>
    %85 = arith.select %28, %84, %83 : vector<8x256xi1>, vector<8x256xf32>
    %86 = arith.select %30, %83, %84 : vector<8x256xi1>, vector<8x256xf32>
    %87 = tpu.concatenate %77, %73, %78, %81, %70, %82, %85, %74, %86 in 0 : vector<8x256xf32>, vector<8x256xf32>, vector<8x256xf32>, vector<8x256xf32>, vector<8x256xf32>, vector<8x256xf32>, vector<8x256xf32>, vector<8x256xf32>, vector<8x256xf32> -> vector<72x256xf32>
    %cst_36 = arith.constant dense<0.000000e+00> : vector<8x256xf32>
    %88 = tpu.matmul %3, %87, %cst_36 {dimension_numbers = #tpu.dot_dimension_numbers<[1], [0], [0], [1], [0, 0, 1, 1], [], []>} : vector<8x72xf32>, vector<72x256xf32>, vector<8x256xf32> -> vector<8x256xf32>
    %89 = vector.broadcast %5 : vector<8x1xf32> to vector<8x256xf32>
    %90 = arith.addf %88, %89 : vector<8x256xf32>
    %cst_37 = arith.constant dense<0.000000e+00> : vector<8xf32>
    %91 = vector.multi_reduction <add>, %90, %cst_37 [1] : vector<8x256xf32> to vector<8xf32>
    %92 = vector.shape_cast %91 : vector<8xf32> to vector<8x1xf32>
    %93 = arith.mulf %90, %90 : vector<8x256xf32>
    %cst_38 = arith.constant dense<0.000000e+00> : vector<8xf32>
    %94 = vector.multi_reduction <add>, %93, %cst_38 [1] : vector<8x256xf32> to vector<8xf32>
    %95 = vector.shape_cast %94 : vector<8xf32> to vector<8x1xf32>
    %cst_39 = arith.constant 3.906250e-03 : f32
    %96 = vector.broadcast %cst_39 : f32 to vector<8x1xf32>
    %97 = arith.mulf %92, %96 : vector<8x1xf32>
    %cst_40 = arith.constant 3.906250e-03 : f32
    %98 = vector.broadcast %cst_40 : f32 to vector<8x1xf32>
    %99 = arith.mulf %95, %98 : vector<8x1xf32>
    %100 = arith.mulf %97, %97 : vector<8x1xf32>
    %101 = arith.subf %99, %100 : vector<8x1xf32>
    %102 = vector.broadcast %97 : vector<8x1xf32> to vector<8x256xf32>
    %103 = arith.subf %90, %102 : vector<8x256xf32>
    %cst_41 = arith.constant 9.99999974E-6 : f32
    %104 = vector.broadcast %cst_41 : f32 to vector<8x1xf32>
    %105 = arith.addf %101, %104 : vector<8x1xf32>
    %106 = math.rsqrt %105 : vector<8x1xf32>
    %107 = vector.broadcast %106 : vector<8x1xf32> to vector<8x256xf32>
    %108 = arith.mulf %103, %107 : vector<8x256xf32>
    %109 = arith.addf %1, %108 : vector<8x256xf32>
    %c0_42 = arith.constant 0 : index
    %c0_43 = arith.constant 0 : index
    %c0_44 = arith.constant 0 : index
    %110 = vector.load %arg6[%c0_42, %c0_43, %c0_44] : memref<1x8x256xf32, #tpu.memory_space<vmem>>, vector<1x8x256xf32>
    %111 = vector.shape_cast %110 : vector<1x8x256xf32> to vector<8x256xf32>
    %112 = vector.shape_cast %109 : vector<8x256xf32> to vector<1x8x256xf32>
    tpu.vector_store %arg6[%c0_42, %c0_43, %c0_44], %112 {strides = array<i32>} : memref<1x8x256xf32, #tpu.memory_space<vmem>>, vector<1x8x256xf32>,
    return
  }
  func.func @transform_0(%arg0: i32) -> (i32, i32, i32) {
    %c0_i32 = arith.constant 0 : i32
    %c0_i32_0 = arith.constant 0 : i32
    %c0_i32_1 = arith.constant 0 : i32
    return %arg0, %c0_i32, %c0_i32_0 : i32, i32, i32
  }
  func.func @transform_1(%arg0: i32) -> (i32, i32) {
    %c0_i32 = arith.constant 0 : i32
    %c0_i32_0 = arith.constant 0 : i32
    %c0_i32_1 = arith.constant 0 : i32
    return %c0_i32, %c0_i32_0 : i32, i32
  }
  func.func @transform_2(%arg0: i32) -> (i32, i32) {
    %c0_i32 = arith.constant 0 : i32
    %c0_i32_0 = arith.constant 0 : i32
    %c0_i32_1 = arith.constant 0 : i32
    return %c0_i32, %c0_i32_0 : i32, i32
  }
  func.func @transform_3(%arg0: i32) -> (i32, i32) {
    %c0_i32 = arith.constant 0 : i32
    %c0_i32_0 = arith.constant 0 : i32
    %c0_i32_1 = arith.constant 0 : i32
    return %c0_i32, %c0_i32_0 : i32, i32
  }
  func.func @transform_4(%arg0: i32) -> (i32, i32) {
    %c0_i32 = arith.constant 0 : i32
    %c0_i32_0 = arith.constant 0 : i32
    %c0_i32_1 = arith.constant 0 : i32
    return %c0_i32, %c0_i32_0 : i32, i32
  }
  func.func @transform_5(%arg0: i32) -> (i32, i32, i32) {
    %c0_i32 = arith.constant 0 : i32
    %c0_i32_0 = arith.constant 0 : i32
    %c0_i32_1 = arith.constant 0 : i32
    return %arg0, %c0_i32, %c0_i32_0 : i32, i32, i32
  }
}

</mosaic_0001>

<bundles_post_ra>
// kernel: tpu_custom_call.1
= control target key start
LH: loop header
LB: loop body
LE: loop exit
PB: predicated region body
PF: predicated region fallthrough
CT: control target
= control target key end

     0   :  { %10 = vsyncpa [#allocation3], 0  ;;  %s1294_s0 = inlined_call_operand.hbm [shape: f32[2,8,256], index: 0, kind: input, shape index: {}]   ;;  %s1295_s1 = inlined_call_operand.vmem [shape: f32[8,72], index: 1, kind: input, shape index: {}]   ;;  %s1296_s2 = inlined_call_operand.vmem [shape: f32[8,1], index: 2, kind: input, shape index: {}]   ;;  %s1297_s3 = inlined_call_operand.vmem [shape: f32[8,72], index: 3, kind: input, shape index: {}]   ;;  %s1298_s4 = inlined_call_operand.vmem [shape: f32[8,1], index: 4, kind: input, shape index: {}]   ;;  %s1299_s5 = inlined_call_operand.hbm [shape: f32[2,8,256], index: 5, kind: output, shape index: {}]  }
   0x1   :  { %12 = vsyncpa [#allocation3 + $0x1], 0 }
   0x2   :  { %13 = vsyncpa [#allocation4], 0 }
   0x3   :  { %15 = vsyncpa [#allocation4 + $0x1], 0  ;;  %s949_s18 = smov 0   ;;  %s951_s19 = smov 0  }
   0x4   :  { %s953_s20 = smov 0   ;;  %s955_s21 = smov 0  }
   0x5 LB: > { %s970_s22 = sadd.s32 4294967295, %s912_s21   ;;  %s659_s23 = sadd.s32 4294967294, %s912_s21   ;;  %s912_s21 = sphi %s955_s21, %s1317_s21   ;;  %s908_s20 = sphi %s953_s20, %s1316_s20   ;;  %s904_s19 = sphi %s951_s19, %s1315_s19   ;;  %s900_s18 = sphi %s949_s18, %s1314_s18  }
   0x6   : > { %s974_s24 = sadd.s32 1, %s912_s21   ;;  %s28_s25 = sadd.s32 1, %s908_s20 }
   0x7   : > { %s25_s26 = ssub.s32 %s912_s21, %s974_s24  ;;  %p35_p0 = scmp.ne.s32.totalorder %s908_s20, %s904_s19 }
   0x8   : > { %p26_p1 = scmp.eq.s32.totalorder %s25_s26, 0  ;;  %p36_p2 = scmp.eq.s32.totalorder %s912_s21, 0 }
   0x9   : > { %p41_p3 = scmp.ne.s32.totalorder %s904_s19, %s900_s18  ;;  %p42_p4 = scmp.eq.s32.totalorder %s970_s22, 0 }
   0xa   : > { %s986_s27 = scalar_select %p26_p1, %s908_s20, %s28_s25  }
   0xb   : > { %p988_p5 = por %p36_p2, %p35_p0  ;;  %p992_p6 = por %p42_p4, %p41_p3 }
   0xc   : > { %p149_p7 = scmp.eq.s32.totalorder %s970_s22, 1  ;;  %p155_p8 = scmp.eq.s32.totalorder %s659_s23, 1 }
   0xd   : > { %p691_p10 = scmp.lt.s32.totalorder %s912_s21, 2  ;;  %s187_s7 = sand.u32 1, %s908_s20  }
   0xe   : > { %p999_p11 = por %p149_p7, %p35_p0  ;;  %p1003_p12 = por %p155_p8, %p41_p3 }
   0xf   : > { %s677_s8 = sshll.u32 %s912_s21, 4  ;;  %s662_s9 = sshll.u32 %s187_s7, 4 }
  0x10   : > { %s196_s12 = scalar_lea.hbm %s1294_s0, %s677_s8  ;;  %s191_s14 = scalar_lea.vmem [#allocation2], %s662_s9 }
  0x11   : > { %s198_s13 = sshll.u32 %s196_s12, 4  ;;  %s200_s15 = sshll.u32 %s191_s14, 4  ;;  %s199_s13 = int_to_ptr.hbm [resolvable:$true] %s198_s13  ;;  %s201_s15 = int_to_ptr.vmem [resolvable:$true] %s200_s15 }
  0x12   : > { %p1014_p13 = pnand %p691_p10, %p988_p5  ;;  %p665_p0 = scmp.ge.s32.totalorder %s912_s21, 1 }
  0x13   : > { %p205_p1 = scmp.lt.s32.totalorder %s912_s21, 3  ;;  %s188_s17 = scalar_lea.sflag [#allocation3], %s187_s7 }
  0x14   : > { %s816_s23 = sshra.s32 %s199_s13, 4  ;;  %p820_p3 = pneg %p1014_p13  ;;  %s817_s23 = int_to_ptr.hbm [resolvable:$true] %s816_s23 }
  0x15   : > { %s818_s25 = scalar_lea.hbm %s817_s23, 16  ;;  %s823_s28 = scalar_lea.hbm %s1294_s0, 32 }
  0x16   : > { %p819_p2 = scmp.ne.s32.totalorder %s817_s23, %s818_s25  ;;  %p824_p5 = scmp.lt.s32.totalorder %s817_s23, %s1294_s0 }
  0x17   : > { %p825_p8 = scmp.lt.s32.totalorder %s823_s28, %s818_s25 }
  0x18   : > { %p821_p4 = pnand %p820_p3, %p819_p2 }
  0x19   : > { %p826_p10 = por %p825_p8, %p824_p5 }
  0x1a   : > { %p822_p7 = pneg %p821_p4 }
  0x1c   : > { %p827_p9 = pnand %p826_p10, %p822_p7 }
  0x1e   : > { %830 = shalt.err (!%p827_p9)
}
  0x1f   : > { %686 = dma.hbm_to_vmem [thread:$0]  (!%p1014_p13), %s199_s13, 256, %s201_s15, %s188_s17  }
  0x20   : > { %p206_p2 = pnand %p665_p0, %p205_p1 }
  0x21   : > { %s1035_s7 = sand.u32 (!%p206_p2), 1, %s904_s19  }
  0x22   : > { %209 = sbr.rel (%p206_p2) target bundleno = 1109 (0x455), region = 40  ;;  %s666_s11 = sshll.u32 (!%p206_p2), %s1035_s7, 4 }
  0x23   : > { %s212_s12 = scalar_lea.sflag (!%p206_p2), [#allocation3], %s1035_s7  ;;  %s215_s14 = scalar_lea.vmem (!%p206_p2), [#allocation2], %s666_s11 }
  0x27   : > { %891 = dma.done.wait (%p992_p6), %s212_s12, 256  }
  0x28   : > { %893 = vsyncadd (%p992_p6), %s212_s12, 4294967040  ;;  %v1045_v0 = vld [vmem:[%s215_s14] sm:$0xff]  ;;  %v1047_v1 = vld [vmem:[%s215_s14 + $0x8] sm:$0xff]  ;;  %s914_s13 = smov 16   ;;  %s915_s15 = smov 112   ;;  %v249_v3 = vlaneseq  ;;  %v918_v22 = vmov 0  }
  0x29   : > { %v730_v2 = vpack.i.bf16 %v1047_v1, %v1045_v0  ;;  %s916_s16 = smov 1   ;;  %s917_s29 = smov 127   ;;  %v247_v21 = vld [vmem:[%s1296_s2] sm:$0xff]  ;;  %770 = vset.pattern.permute.xlu2 %v918_v22  ;;  %811 = vset.pattern.permute.xlu0 %v918_v22  ;;  %vm356_vm9 = vcmask 588800  }
  0x2a   : > { %v1054_v5 = vand.u32 127, %v249_v3  ;;  %s678_s12 = sshll.u32 %s970_s22, 4  ;;  %s573_s17 = scalar_lea.sflag [#allocation4], %s1035_s7 }
  0x2b   : > { %731 = vrot.lane.b32.xlu0 %v730_v2, %s914_s13  ;;  %751 = vrot.lane.b32.xlu2 %v730_v2, %s916_s16  ;;  %s866_s8 = scalar_lea.hbm %s1299_s5, 32 }
  0x2c   : > { %v1057_v6 = vadd.s32 128, %v1054_v5  ;;  %vm276_vm0 = vcmp.lt.s32.totalorder %v1054_v5, 16  ;;  %vm294_vm1 = vcmp.lt.s32.totalorder %v1054_v5, 112  ;;  %v256_v26 = vand.u32 15, %v1054_v5 }
  0x2d   : > { %vm305_vm3 = vcmp.lt.s32.totalorder %v1054_v5, 1  ;;  %vm312_vm5 = vcmp.lt.s32.totalorder %v1054_v5, 127 }
  0x2e   : > { %vm279_vm2 = vcmp.ge.s32.totalorder %v1057_v6, 240  ;;  %v263_v24 = vand.u32 15, %v1057_v6  ;;  %vm1092_vm4 = vcmp.eq.s32.totalorder %v256_v26, 15  ;;  %vm1113_vm7 = vcmp.eq.s32.totalorder %v256_v26, 0 }
  0x30   : > { %vm1097_vm6 = vcmp.eq.s32.totalorder %v263_v24, 15  ;;  %vm1119_vm8 = vcmp.eq.s32.totalorder %v263_v24, 0 }
  0x33   : > { %736 = vrot.lane.b32.xlu0 %v730_v2, %s915_s15  ;;  %756 = vrot.lane.b32.xlu2 %v730_v2, %s917_s29 }
  0x3b   : > { %353 = vperm.xlu2 %770, %v247_v21  }
  0x85   : > { %v752_v20 = vpop.permute.xlu2 %751 }
  0x86   : > { %v754_v29 = vunpack.i.h.bf16 %v752_v20  ;;  %v753_v31 = vunpack.i.l.bf16 %v752_v20 }
  0x88   : > { %v324_v45 = vsel %vm305_vm3, %v754_v29, %v753_v31  ;;  %v323_v48 = vsel %vm305_vm3, %v753_v31, %v754_v29 }
  0x8d   : > { %v757_v25 = vpop.permute.xlu2 %756 }
  0x8e   : > { %v759_v32 = vunpack.i.h.bf16 %v757_v25  ;;  %v758_v35 = vunpack.i.l.bf16 %v757_v25 }
  0x90   : > { %v329_v47 = vsel %vm312_vm5, %v758_v35, %v759_v32  ;;  %v330_v49 = vsel %vm312_vm5, %v759_v32, %v758_v35 }
  0x91   : > { %v333_v56 = vsel %vm1092_vm4, %v324_v45, %v329_v47  ;;  %v334_v57 = vsel %vm1097_vm6, %v323_v48, %v330_v49  ;;  %v331_v62 = vsel %vm1113_vm7, %v329_v47, %v324_v45  ;;  %v332_v63 = vsel %vm1119_vm8, %v330_v49, %v323_v48 }
  0x9d   : > { %v732_v4 = vpop.permute.xlu0 %731 }
  0x9e   : > { %v734_v7 = vunpack.i.h.bf16 %v732_v4  ;;  %v733_v8 = vunpack.i.l.bf16 %v732_v4 }
  0xa0   : > { %v1065_v12 = vsel %vm276_vm0, %v733_v8, %v734_v7  ;;  %v289_v13 = vsel %vm276_vm0, %v734_v7, %v733_v8  ;;  %v245_v8 = vld [vmem:[%s1295_s1] sm:$0xff] }
  0xa5   : > { %v737_v9 = vpop.permute.xlu0 %736 }
  0xa6   : > { %v739_v10 = vunpack.i.h.bf16 %v737_v9  ;;  %v738_v11 = vunpack.i.l.bf16 %v737_v9 }
  0xa8   : > { %v295_v14 = vsel %vm294_vm1, %v738_v11, %v739_v10  ;;  %v296_v15 = vsel %vm294_vm1, %v739_v10, %v738_v11  ;;  %v354_v11 = vpop.permute.xlu2 %353 }
  0xa9   : > { %v1075_v16 = vsel %vm276_vm0, %v295_v14, %v289_v13  ;;  %v300_v17 = vsel %vm279_vm2, %v1065_v12, %v296_v15 }
  0xaa   : > { %v760_v18 = vpack.i.bf16 %v1065_v12, %v1075_v16  ;;  %v740_v19 = vpack.i.bf16 %v300_v17, %v295_v14 }
  0xac   : > { %761 = vrot.lane.b32.xlu0 %v760_v18, %s916_s16  ;;  %741 = vrot.lane.b32.xlu1 %v740_v19, %s916_s16 }
  0xb4   : > { %746 = vrot.lane.b32.xlu1 %v740_v19, %s917_s29 }
  0xbc   : > { %766 = vrot.lane.b32.xlu1 %v760_v18, %s917_s29 }
 0x11e   : > { %v742_v23 = vpop.permute.xlu1 %741  ;;  %v762_v50 = vpop.permute.xlu0 %761 }
 0x11f   : > { %v744_v27 = vunpack.i.h.bf16 %v742_v23  ;;  %v743_v28 = vunpack.i.l.bf16 %v742_v23  ;;  %v764_v58 = vunpack.i.h.bf16 %v762_v50  ;;  %v763_v59 = vunpack.i.l.bf16 %v762_v50 }
 0x121   : > { %v340_v38 = vsel %vm305_vm3, %v744_v27, %v743_v28  ;;  %v339_v40 = vsel %vm305_vm3, %v743_v28, %v744_v27  ;;  %v307_v2 = vsel %vm305_vm3, %v764_v58, %v763_v59  ;;  %v306_v3 = vsel %vm305_vm3, %v763_v59, %v764_v58  ;;  %v248_v59 = vld [vmem:[%s1298_s4] sm:$0xff] }
 0x126   : > { %v747_v30 = vpop.permute.xlu1 %746 }
 0x127   : > { %v749_v33 = vunpack.i.h.bf16 %v747_v30  ;;  %v748_v34 = vunpack.i.l.bf16 %v747_v30 }
 0x129   : > { %v345_v39 = vsel %vm312_vm5, %v748_v34, %v749_v33  ;;  %v346_v41 = vsel %vm312_vm5, %v749_v33, %v748_v34 }
 0x12a   : > { %v349_v42 = vsel %vm1092_vm4, %v340_v38, %v345_v39  ;;  %v350_v43 = vsel %vm1097_vm6, %v339_v40, %v346_v41  ;;  %v347_v52 = vsel %vm1113_vm7, %v345_v39, %v340_v38  ;;  %v348_v53 = vsel %vm1119_vm8, %v346_v41, %v339_v40 }
 0x12b   : > { %367 = vmatpush.msra.mxu0 %v349_v42  ;;  %387 = vmatpush.msra.mxu1 %v350_v43 }
 0x12d   : > { %368 = vmatpush.msra.mxu0 %v295_v14  ;;  %388 = vmatpush.msra.mxu1 %v300_v17 }
 0x12e   : > { %v767_v51 = vpop.permute.xlu1 %766 }
 0x12f   : > { %v769_v54 = vunpack.i.h.bf16 %v767_v51  ;;  %v768_v55 = vunpack.i.l.bf16 %v767_v51  ;;  %369 = vmatpush.msra.mxu0 %v347_v52  ;;  %389 = vmatpush.msra.mxu1 %v348_v53 }
 0x131   : > { %370 = vmatpush.msra.mxu0 %v333_v56  ;;  %390 = vmatpush.msra.mxu1 %v334_v57  ;;  %v313_v60 = vsel %vm312_vm5, %v768_v55, %v769_v54  ;;  %v314_v61 = vsel %vm312_vm5, %v769_v54, %v768_v55 }
 0x132   : > { %v317_v4 = vsel %vm1092_vm4, %v307_v2, %v313_v60  ;;  %v318_v7 = vsel %vm1097_vm6, %v306_v3, %v314_v61  ;;  %v315_v9 = vsel %vm1113_vm7, %v313_v60, %v307_v2  ;;  %v316_v10 = vsel %vm1119_vm8, %v314_v61, %v306_v3 }
 0x133   : > { %371 = vmatpush.msra.mxu0 %v1045_v0  ;;  %391 = vmatpush.msra.mxu1 %v1047_v1 }
 0x135   : > { %372 = vmatpush.msra.mxu0 %v331_v62  ;;  %392 = vmatpush.msra.mxu1 %v332_v63 }
 0x137   : > { %373 = vmatpush.msra.mxu0 %v317_v4  ;;  %393 = vmatpush.msra.mxu1 %v318_v7 }
 0x139   : > { %374 = vmatpush.msra.mxu0 %v1075_v16  ;;  %394 = vmatpush.msra.mxu1 %v1065_v12 }
 0x13b   : > { %375 = vmatpush.msra.mxu0 %v315_v9  ;;  %395 = vmatpush.msra.mxu1 %v316_v10 }
 0x13c   : > { %668 = vmatmul.msk.f32.vlgmr.msra.gmra.mxu0 %vm356_vm9, %v245_v8  ;;  %669 = vmatmul.msk.f32.vlgmr.msra.gmra.mxu1 %vm356_vm9, %v245_v8 }
 0x1b9   : > { %v377_v13 = vpop.f32.mrf.mxu0  ;;  %v397_v12 = vpop.f32.mrf.mxu1 }
 0x1ba   : > { %v378_v14 = vadd.f32 %v377_v13, %v354_v11  ;;  %v398_v15 = vadd.f32 %v397_v12, %v354_v11 }
 0x1bc   : > { %v400_v16 = vadd.f32 %v398_v15, %v378_v14  ;;  %v403_v17 = vmul.f32 %v378_v14, %v378_v14  ;;  %v404_v18 = vmul.f32 %v398_v15, %v398_v15 }
 0x1be   : > { %401 = vadd.xlane.f32.xlu0 %v400_v16  ;;  %v405_v19 = vadd.f32 %v404_v18, %v403_v17 }
 0x1c0   : > { %406 = vadd.xlane.f32.xlu1 %v405_v19 }
 0x231   : > { %v402_v20 = vpop.xlane.xlu0 %401 }
 0x232   : > { %v408_v21 = vmul.f32 0.00390625, %v402_v20 }
 0x233   : > { %v407_v22 = vpop.xlane.xlu1 %406 }
 0x234   : > { %v409_v23 = vmul.f32 0.00390625, %v407_v22  ;;  %v410_v24 = vmul.f32 %v408_v21, %v408_v21  ;;  %v412_v33 = vsub.f32 %v378_v14, %v408_v21  ;;  %v413_v34 = vsub.f32 %v398_v15, %v408_v21 }
 0x236   : > { %v411_v25 = vsub.f32 %v409_v23, %v410_v24 }
 0x238   : > { %v414_v26 = vadd.f32 1e-05, %v411_v25 }
 0x23a   : > { %812 = vrsqrt.f32 %v414_v26  ;;  %vm421_vm11 = vweird.f32 %v414_v26 }
 0x240   : > { %v813_v27 = vpop.eup %812 }
 0x241   : > { %v416_v28 = vmul.f32 %v813_v27, %v414_v26  ;;  %vm422_vm10 = vweird.f32 %v813_v27 }
 0x242   : > { %vm423_vm12 = vmor %vm421_vm11, %vm422_vm10 }
 0x243   : > { %v417_v29 = vmul.f32 %v813_v27, %v416_v28 }
 0x245   : > { %v418_v30 = vmul.f32 0.5, %v417_v29 }
 0x247   : > { %v419_v31 = vsub.f32 1.5, %v418_v30 }
 0x249   : > { %v420_v32 = vmul.f32 %v813_v27, %v419_v31 }
 0x24b   : > { %v424_v35 = vsel %vm423_vm12, %v813_v27, %v420_v32 }
 0x24c   : > { %v1166_v38 = vmul.f32 %v424_v35, %v412_v33  ;;  %v1168_v39 = vmul.f32 %v424_v35, %v413_v34 }
 0x24e   : > { %v427_v40 = vmax.f32 %v1166_v38, 0.0  ;;  %v428_v41 = vmax.f32 %v1168_v39, 0.0 }
 0x250   : > { %v771_v42 = vpack.i.bf16 %v428_v41, %v427_v40 }
 0x252   : > { %772 = vrot.lane.b32.xlu2 %v771_v42, %s914_s13 }
 0x25a   : > { %777 = vrot.lane.b32.xlu2 %v771_v42, %s915_s15  ;;  %s584_s15 = scalar_lea.hbm %s1299_s5, %s678_s12 }
 0x25b   : > { %s588_s22 = sshll.u32 %s584_s15, 4  ;;  %s589_s22 = int_to_ptr.hbm [resolvable:$true] %s588_s22 }
 0x25c   : > { %s860_s23 = sshra.s32 %s589_s22, 4  ;;  %s861_s23 = int_to_ptr.hbm [resolvable:$true] %s860_s23 }
 0x25d   : > { %s862_s25 = scalar_lea.hbm %s861_s23, 16  ;;  %p867_p0 = scmp.lt.s32.totalorder %s861_s23, %s1299_s5 }
 0x25e   : > { %p863_p6 = scmp.ne.s32.totalorder %s861_s23, %s862_s25  ;;  %p868_p1 = scmp.lt.s32.totalorder %s866_s8, %s862_s25 }
 0x260   : > { %p864_p9 = pnand %p863_p6, %p999_p11  ;;  %p869_p3 = por %p868_p1, %p867_p0 }
 0x262   : > { %782 = vrot.lane.b32.xlu2 %v771_v42, %s916_s16  ;;  %p865_p13 = pneg %p864_p9 }
 0x264   : > { %p870_p4 = pnand %p869_p3, %p865_p13 }
 0x2ac   : > { %v773_v43 = vpop.permute.xlu2 %772 }
 0x2ad   : > { %v775_v45 = vunpack.i.h.bf16 %v773_v43  ;;  %v774_v47 = vunpack.i.l.bf16 %v773_v43 }
 0x2af   : > { %v1177_v51 = vsel %vm276_vm0, %v774_v47, %v775_v45  ;;  %v434_v52 = vsel %vm276_vm0, %v775_v45, %v774_v47 }
 0x2b4   : > { %v778_v48 = vpop.permute.xlu2 %777 }
 0x2b5   : > { %v780_v49 = vunpack.i.h.bf16 %v778_v48  ;;  %v779_v50 = vunpack.i.l.bf16 %v778_v48 }
 0x2b7   : > { %v439_v53 = vsel %vm294_vm1, %v779_v50, %v780_v49  ;;  %v440_v54 = vsel %vm294_vm1, %v780_v49, %v779_v50 }
 0x2b8   : > { %v1187_v55 = vsel %vm276_vm0, %v439_v53, %v434_v52  ;;  %v444_v56 = vsel %vm279_vm2, %v1177_v51, %v440_v54 }
 0x2b9   : > { %v806_v57 = vpack.i.bf16 %v1177_v51, %v1187_v55  ;;  %v786_v58 = vpack.i.bf16 %v444_v56, %v439_v53 }
 0x2bb   : > { %807 = vrot.lane.b32.xlu1 %v806_v57, %s917_s29  ;;  %802 = vrot.lane.b32.xlu0 %v806_v57, %s916_s16 }
 0x2bc   : > { %787 = vrot.lane.b32.xlu2 %v786_v58, %s916_s16  ;;  %v783_v6 = vpop.permute.xlu2 %782  ;;  %s242_s16 = scalar_lea.vmem [#allocation5], %s666_s11 }
 0x2bd   : > { %v785_v13 = vunpack.i.h.bf16 %v783_v6  ;;  %v784_v12 = vunpack.i.l.bf16 %v783_v6 }
 0x2bf   : > { %v466_v19 = vsel %vm305_vm3, %v785_v13, %v784_v12  ;;  %v465_v21 = vsel %vm305_vm3, %v784_v12, %v785_v13 }
 0x2c4   : > { %792 = vrot.lane.b32.xlu2 %v786_v58, %s917_s29 }
 0x2cc   : > { %797 = vrot.lane.b32.xlu2 %v771_v42, %s917_s29  ;;  %s586_s29 = sshll.u32 %s242_s16, 4  ;;  %s587_s29 = int_to_ptr.vmem [resolvable:$true] %s586_s29 }
 0x2d4   : > { %495 = vperm.xlu2 %770, %v248_v59  }
 0x316   : > { %v788_v60 = vpop.permute.xlu2 %787 }
 0x317   : > { %v790_v61 = vunpack.i.h.bf16 %v788_v60  ;;  %v789_v62 = vunpack.i.l.bf16 %v788_v60 }
 0x319   : > { %v482_v4 = vsel %vm305_vm3, %v790_v61, %v789_v62  ;;  %v481_v8 = vsel %vm305_vm3, %v789_v62, %v790_v61 }
 0x31e   : > { %v793_v63 = vpop.permute.xlu2 %792 }
 0x31f   : > { %v795_v2 = vunpack.i.h.bf16 %v793_v63  ;;  %v794_v3 = vunpack.i.l.bf16 %v793_v63 }
 0x321   : > { %v487_v7 = vsel %vm312_vm5, %v794_v3, %v795_v2  ;;  %v488_v9 = vsel %vm312_vm5, %v795_v2, %v794_v3 }
 0x322   : > { %v491_v10 = vsel %vm1092_vm4, %v482_v4, %v487_v7  ;;  %v492_v11 = vsel %vm1097_vm6, %v481_v8, %v488_v9  ;;  %v489_v15 = vsel %vm1113_vm7, %v487_v7, %v482_v4  ;;  %v490_v16 = vsel %vm1119_vm8, %v488_v9, %v481_v8 }
 0x323   : > { %508 = vmatpush.msra.mxu2 %v491_v10  ;;  %528 = vmatpush.msra.mxu3 %v492_v11 }
 0x325   : > { %509 = vmatpush.msra.mxu2 %v439_v53  ;;  %529 = vmatpush.msra.mxu3 %v444_v56 }
 0x326   : > { %v798_v14 = vpop.permute.xlu2 %797 }
 0x327   : > { %v800_v17 = vunpack.i.h.bf16 %v798_v14  ;;  %v799_v18 = vunpack.i.l.bf16 %v798_v14  ;;  %510 = vmatpush.msra.mxu2 %v489_v15  ;;  %530 = vmatpush.msra.mxu3 %v490_v16 }
 0x329   : > { %v471_v20 = vsel %vm312_vm5, %v799_v18, %v800_v17  ;;  %v472_v22 = vsel %vm312_vm5, %v800_v17, %v799_v18 }
 0x32a   : > { %v475_v23 = vsel %vm1092_vm4, %v466_v19, %v471_v20  ;;  %v476_v24 = vsel %vm1097_vm6, %v465_v21, %v472_v22  ;;  %v473_v27 = vsel %vm1113_vm7, %v471_v20, %v466_v19  ;;  %v474_v28 = vsel %vm1119_vm8, %v472_v22, %v465_v21 }
 0x32b   : > { %511 = vmatpush.msra.mxu2 %v475_v23  ;;  %531 = vmatpush.msra.mxu3 %v476_v24 }
 0x32d   : > { %512 = vmatpush.msra.mxu2 %v427_v40  ;;  %532 = vmatpush.msra.mxu3 %v428_v41  ;;  %v808_v25 = vpop.permute.xlu1 %807  ;;  %v803_v26 = vpop.permute.xlu0 %802  ;;  %v246_v41 = vld [vmem:[%s1297_s3] sm:$0xff] }
 0x32e   : > { %v810_v29 = vunpack.i.h.bf16 %v808_v25  ;;  %v809_v30 = vunpack.i.l.bf16 %v808_v25  ;;  %v805_v31 = vunpack.i.h.bf16 %v803_v26  ;;  %v804_v32 = vunpack.i.l.bf16 %v803_v26  ;;  %v496_v37 = vpop.permute.xlu2 %495 }
 0x32f   : > { %513 = vmatpush.msra.mxu2 %v473_v27  ;;  %533 = vmatpush.msra.mxu3 %v474_v28 }
 0x330   : > { %v450_v33 = vsel %vm305_vm3, %v805_v31, %v804_v32  ;;  %v455_v34 = vsel %vm312_vm5, %v809_v30, %v810_v29  ;;  %v449_v35 = vsel %vm305_vm3, %v804_v32, %v805_v31  ;;  %v456_v38 = vsel %vm312_vm5, %v810_v29, %v809_v30 }
 0x331   : > { %v459_v39 = vsel %vm1092_vm4, %v450_v33, %v455_v34  ;;  %v460_v40 = vsel %vm1097_vm6, %v449_v35, %v456_v38  ;;  %v457_v5 = vsel %vm1113_vm7, %v455_v34, %v450_v33  ;;  %v458_v36 = vsel %vm1119_vm8, %v456_v38, %v449_v35 }
 0x332   : > { %514 = vmatpush.msra.mxu2 %v459_v39  ;;  %534 = vmatpush.msra.mxu3 %v460_v40 }
 0x334   : > { %515 = vmatpush.msra.mxu2 %v1187_v55  ;;  %535 = vmatpush.msra.mxu3 %v1177_v51 }
 0x336   : > { %516 = vmatpush.msra.mxu2 %v457_v5  ;;  %536 = vmatpush.msra.mxu3 %v458_v36 }
 0x337   : > { %670 = vmatmul.msk.f32.vlgmr.msra.gmra.mxu2 %vm356_vm9, %v246_v41  ;;  %671 = vmatmul.msk.f32.vlgmr.msra.gmra.mxu3 %vm356_vm9, %v246_v41 }
 0x3ba   : > { %v518_v42 = vpop.f32.mrf.mxu2  ;;  %v538_v43 = vpop.f32.mrf.mxu3 }
 0x3bb   : > { %v519_v45 = vadd.f32 %v518_v42, %v496_v37  ;;  %v539_v47 = vadd.f32 %v538_v43, %v496_v37 }
 0x3bd   : > { %v541_v48 = vadd.f32 %v539_v47, %v519_v45  ;;  %v544_v49 = vmul.f32 %v519_v45, %v519_v45  ;;  %v545_v50 = vmul.f32 %v539_v47, %v539_v47 }
 0x3bf   : > { %542 = vadd.xlane.f32.xlu2 %v541_v48  ;;  %v546_v44 = vadd.f32 %v545_v50, %v544_v49 }
 0x3c1   : > { %547 = vadd.xlane.f32.xlu0 %v546_v44 }
 0x432   : > { %v543_v46 = vpop.xlane.xlu2 %542 }
 0x433   : > { %v549_v51 = vmul.f32 0.00390625, %v543_v46 }
 0x434   : > { %v548_v52 = vpop.xlane.xlu0 %547 }
 0x435   : > { %v550_v53 = vmul.f32 0.00390625, %v548_v52  ;;  %v551_v54 = vmul.f32 %v549_v51, %v549_v51  ;;  %v553_v62 = vsub.f32 %v519_v45, %v549_v51  ;;  %v554_v63 = vsub.f32 %v539_v47, %v549_v51 }
 0x437   : > { %v552_v55 = vsub.f32 %v550_v53, %v551_v54 }
 0x439   : > { %v555_v56 = vadd.f32 1e-05, %v552_v55 }
 0x43b   : > { %814 = vrsqrt.f32 %v555_v56  ;;  %vm562_vm14 = vweird.f32 %v555_v56 }
 0x441   : > { %v815_v57 = vpop.eup %814 }
 0x442   : > { %v557_v58 = vmul.f32 %v815_v57, %v555_v56  ;;  %vm563_vm13 = vweird.f32 %v815_v57 }
 0x443   : > { %vm564_vm15 = vmor %vm562_vm14, %vm563_vm13 }
 0x444   : > { %v558_v59 = vmul.f32 %v815_v57, %v557_v58 }
 0x446   : > { %v559_v6 = vmul.f32 0.5, %v558_v59 }
 0x448   : > { %v560_v60 = vsub.f32 1.5, %v559_v6 }
 0x44a   : > { %v561_v61 = vmul.f32 %v815_v57, %v560_v60 }
 0x44c   : > { %v565_v2 = vsel %vm564_vm15, %v815_v57, %v561_v61 }
 0x44d   : > { %v566_v3 = vmul.f32 %v565_v2, %v553_v62  ;;  %v567_v4 = vmul.f32 %v565_v2, %v554_v63 }
 0x44f   : > { %v568_v7 = vadd.f32 %v566_v3, %v1045_v0  ;;  %v569_v8 = vadd.f32 %v567_v4, %v1047_v1 }
 0x451   : > { %570 = vst [vmem:[%s242_s16] sm:$0xff] %v568_v7 }
 0x452   : > { %571 = vst [vmem:[%s242_s16 + $0x8] sm:$0xff] %v569_v8 }
 0x453   : > { %873 = shalt.err (!%p870_p4)
}
 0x454   : > { %681 = dma.vmem_to_hbm [thread:$0]  (%p999_p11), %s587_s29, 256, %s589_s22, %s573_s17  }
 0x455 PF: > { %s600_s7 = sand.u32 1, %s900_s18   ;;  %p1313_p7 = scmp.ge.s32.totalorder %s912_s21, 2 }
 0x456   : > { %s601_s10 = scalar_lea.sflag [#allocation4], %s600_s7 }
 0x457   : > { %p688_p5 = pnand %p1313_p7, %p1003_p12 }
 0x459   : > { %p689_p8 = pneg %p688_p5 }
 0x45b   : > { %895 = dma.done.wait (%p689_p8), %s601_s10, 256  }
 0x45c   : > { %897 = vsyncadd (%p689_p8), %s601_s10, 4294967040  ;;  %p18_p10 = scmp.ge.s32.totalorder %s974_s24, 4   ;;  %s1314_s18 = smov %s904_s19 }
 0x45d   : > { %s1315_s19 = smov %s908_s20  ;;  %s1316_s20 = smov %s986_s27 }
 0x45e   : > { %s1317_s21 = smov %s974_s24  ;;  %20 = sbr.rel (!%p18_p10) target bundleno = 5 (0x5), region = 85 }
 0x463   :  { %607 = vsyncpa [#allocation3], 1 }
 0x464   :  { %609 = vsyncpa [#allocation3 + $0x1], 1 }
 0x465   :  { %610 = vsyncpa [#allocation4], 1 }
 0x466   :  { %612 = vsyncpa [#allocation4 + $0x1], 1 }

</bundles_post_ra>
